<compile_context>
chip_gen: v7x
topology: tpu7x:2x2x1
jax: 0.10.0
libtpu: 0.0.40
codegen_flags: <defaults>
</compile_context>

<pallas_src>
import functools

import jax
import jax.numpy as jnp
from jax import lax
from jax.experimental import pallas as pl
from jax.experimental.pallas import tpu as pltpu

INPUT_SIZE = 8      # state_size
HIDDEN = 64
OUTPUT_SIZE = 4     # num_actions

LANE = 128          # lane width (batch padding granularity)
TB_MAX = 8192       # max batch-lanes per grid step
SPLIT_MIN = 2048    # above this, use >=2 grid steps so v7x megacore can shard


def _round_up(n, m):
    return ((n + m - 1) // m) * m


def _dqn_mlp_kernel(x_ref, w1_ref, b1_ref, w2_ref, b2_ref, w3_ref, b3_ref,
                    q_ref, act_ref):
    # x arrives untransposed: bf16 [tb, 8]. Layer 1 contracts the feature axis
    # of both operands (== W1 @ x.T) so the result is already batch-on-lanes.
    x = x_ref[...]                                                   # bf16 [tb, 8]
    h1 = lax.dot_general(w1_ref[...], x, (((1,), (1,)), ((), ())),
                         preferred_element_type=jnp.float32)         # f32 [64, tb]
    # Bias add + ReLU in f32 (VPU-friendly on v5e), single bf16 materialization.
    h1 = jnp.maximum(h1 + b1_ref[...], 0.0).astype(jnp.bfloat16)     # bf16 [64, tb]

    h2 = jnp.dot(w2_ref[...], h1,
                 preferred_element_type=jnp.float32)                 # f32 [64, tb]
    h2 = jnp.maximum(h2 + b2_ref[...], 0.0).astype(jnp.bfloat16)     # bf16 [64, tb]

    q = jnp.dot(w3_ref[...], h2,
                preferred_element_type=jnp.float32) + b3_ref[...]    # f32 [4, tb]
    q_ref[...] = q.astype(jnp.bfloat16)                              # bf16 writeback

    # Fused greedy action: argmax over the 4 actions (sublane axis, XLU reduce),
    # ties resolved to the lowest index (matches jnp.argmax). Done on f32 q.
    qmax = jnp.max(q, axis=0, keepdims=True)                         # [1, tb]
    row_ids = lax.broadcasted_iota(jnp.int32, q.shape, 0)            # [4, tb]
    cand = jnp.where(q >= qmax, row_ids, jnp.int32(OUTPUT_SIZE))
    act_ref[...] = jnp.min(cand, axis=0, keepdims=True)              # int32 [1, tb]


@jax.jit
def dqn_forward(x, params):
    """x: [B, INPUT_SIZE] f32 -> (q: [B, OUTPUT_SIZE] f32, action: [B] int32)."""
    w1, b1, w2, b2, w3, b3 = params
    B = x.shape[0]

    # Pad batch to full lanes. Small/medium batches: one grid step (per-step
    # overhead dominates). Large batches: >=2 steps so the "parallel" axis can
    # span both v7x TensorCores, capped at TB_MAX lanes/step (VMEM-safe on all
    # generations: ~<8 MiB of intermediates at tb=8192).
    B_pad = _round_up(max(B, 1), LANE)
    if B_pad <= SPLIT_MIN:
        tb = B_pad
    else:
        half = _round_up((B_pad + 1) // 2, LANE)
        tb = min(TB_MAX, half)
        B_pad = _round_up(B_pad, tb)
    grid = (B_pad // tb,)

    # Pad + cast fuse under jit; NO wrapper transpose (x stays [B_pad, 8]).
    x_p = jnp.pad(x, ((0, B_pad - B), (0, 0))).astype(jnp.bfloat16)

    resident = lambda a: pl.BlockSpec(a.shape, lambda i: (0, 0))     # VMEM-resident

    q_t, act = pl.pallas_call(
        _dqn_mlp_kernel,
        out_shape=(
            jax.ShapeDtypeStruct((OUTPUT_SIZE, B_pad), jnp.bfloat16),
            jax.ShapeDtypeStruct((1, B_pad), jnp.int32),
        ),
        grid=grid,
        in_specs=[
            pl.BlockSpec((tb, INPUT_SIZE), lambda i: (i, 0)),        # x, untransposed
            resident(w1), resident(b1),
            resident(w2), resident(b2),
            resident(w3), resident(b3),
        ],
        out_specs=(
            pl.BlockSpec((OUTPUT_SIZE, tb), lambda i: (0, i)),       # lane-dense q
            pl.BlockSpec((1, tb), lambda i: (0, i)),
        ),
        compiler_params=pltpu.CompilerParams(
            dimension_semantics=("parallel",)),
    )(x_p, w1, b1, w2, b2, w3, b3)

    # Final transpose / slice folded into the jitted graph (fuses with consumer).
    q = q_t[:, :B].astype(jnp.float32).T        # [B, OUTPUT_SIZE] f32
    actions = act[0, :B]                        # [B] int32 greedy actions
    return q, actions


def init_params(key):
    """PyTorch nn.Linear default init (U[-1/sqrt(fan_in), +]); W stored [out, in]."""
    def linear(key, fan_in, fan_out):
        kw, kb = jax.random.split(key)
        bound = 1.0 / jnp.sqrt(jnp.float32(fan_in))
        w = jax.random.uniform(kw, (fan_out, fan_in), jnp.float32, -bound, bound)
        b = jax.random.uniform(kb, (fan_out, 1), jnp.float32, -bound, bound)
        # Weights bf16 (MXU inputs / halved DMA bytes), biases f32.
        return w.astype(jnp.bfloat16), b

    k1, k2, k3 = jax.random.split(key, 3)
    w1, b1 = linear(k1, INPUT_SIZE, HIDDEN)
    w2, b2 = linear(k2, HIDDEN, HIDDEN)
    w3, b3 = linear(k3, HIDDEN, OUTPUT_SIZE)
    return (w1, b1, w2, b2, w3, b3)


def _reference(x, params):
    """Pure-JAX reference mirroring the kernel math (bf16 dot inputs, f32 acc)."""
    w1, b1, w2, b2, w3, b3 = params

    def linear(h, w, b):
        return jnp.dot(h.astype(jnp.bfloat16), w.astype(jnp.bfloat16).T,
                       preferred_element_type=jnp.float32) + b.T

    h1 = jnp.maximum(linear(x, w1, b1), 0.0)
    h2 = jnp.maximum(linear(h1, w2, b2), 0.0)
    return linear(h2, w3, b3)


if __name__ == "__main__":
    key = jax.random.PRNGKey(0)
    kx, kp = jax.random.split(key)

    batch = 2
    x = jax.random.normal(kx, (batch, INPUT_SIZE), jnp.float32)
    params = init_params(kp)

    q, actions = dqn_forward(x, params)
    q = jax.block_until_ready(q)
    actions = jax.block_until_ready(actions)

    ref = _reference(x, params)
    assert q.shape == (batch, OUTPUT_SIZE)
    assert actions.shape == (batch,)
    assert jnp.allclose(q, ref, atol=2e-2, rtol=2e-2)
    # Robust greedy-action check (avoids exact-tie flakiness between the kernel's
    # MXU accumulation order and the XLA reference): the chosen action's Q must
    # be within tolerance of the reference optimum.
    chosen = jnp.take_along_axis(ref, actions[:, None], axis=-1)[:, 0]
    assert bool(jnp.all(chosen >= jnp.max(ref, axis=-1) - 1e-2))

    print("KERNEL_OK")
</pallas_src>

<mosaic_0001>
module attributes {stable_mosaic.version = 11 : i64} {
  func.func @_dqn_mlp_kernel(%arg0: i32, %arg1: memref<128x8xbf16, #tpu.memory_space<vmem>>, %arg2: memref<64x8xbf16, #tpu.memory_space<vmem>>, %arg3: memref<64x1xf32, #tpu.memory_space<vmem>>, %arg4: memref<64x64xbf16, #tpu.memory_space<vmem>>, %arg5: memref<64x1xf32, #tpu.memory_space<vmem>>, %arg6: memref<4x64xbf16, #tpu.memory_space<vmem>>, %arg7: memref<4x1xf32, #tpu.memory_space<vmem>>, %arg8: memref<4x128xbf16, #tpu.memory_space<vmem>>, %arg9: memref<1x128xi32, #tpu.memory_space<vmem>>) attributes {dimension_semantics = [#tpu.dimension_semantics<parallel>], iteration_bounds = array<i64: 1>, scalar_prefetch = 0 : i64, scratch_operands = 0 : i64, tpu.core_type = #tpu.core_type<tc>, window_params = [{transform_indices = @transform_0, window_bounds = array<i64: 128, 8>}, {pipeline_mode = #tpu.pipeline_mode<synchronous>, transform_indices = @transform_1, window_bounds = array<i64: 64, 8>}, {pipeline_mode = #tpu.pipeline_mode<synchronous>, transform_indices = @transform_2, window_bounds = array<i64: 64, 1>}, {pipeline_mode = #tpu.pipeline_mode<synchronous>, transform_indices = @transform_3, window_bounds = array<i64: 64, 64>}, {pipeline_mode = #tpu.pipeline_mode<synchronous>, transform_indices = @transform_4, window_bounds = array<i64: 64, 1>}, {pipeline_mode = #tpu.pipeline_mode<synchronous>, transform_indices = @transform_5, window_bounds = array<i64: 4, 64>}, {pipeline_mode = #tpu.pipeline_mode<synchronous>, transform_indices = @transform_6, window_bounds = array<i64: 4, 1>}, {transform_indices = @transform_7, window_bounds = array<i64: 4, 128>}, {transform_indices = @transform_8, window_bounds = array<i64: 1, 128>}]} {
    %c0 = arith.constant 0 : index
    %c0_0 = arith.constant 0 : index
    %0 = vector.load %arg1[%c0, %c0_0] : memref<128x8xbf16, #tpu.memory_space<vmem>>, vector<128x8xbf16>
    %c0_1 = arith.constant 0 : index
    %c0_2 = arith.constant 0 : index
    %1 = vector.load %arg2[%c0_1, %c0_2] : memref<64x8xbf16, #tpu.memory_space<vmem>>, vector<64x8xbf16>
    %cst = arith.constant dense<0.000000e+00> : vector<64x128xf32>
    %2 = tpu.matmul %1, %0, %cst {dimension_numbers = #tpu.dot_dimension_numbers<[1], [1], [0], [0], [0, 0, 1, 0], [], []>} : vector<64x8xbf16>, vector<128x8xbf16>, vector<64x128xf32> -> vector<64x128xf32>
    %c0_3 = arith.constant 0 : index
    %c0_4 = arith.constant 0 : index
    %3 = vector.load %arg3[%c0_3, %c0_4] : memref<64x1xf32, #tpu.memory_space<vmem>>, vector<64x1xf32>
    %4 = vector.broadcast %3 : vector<64x1xf32> to vector<64x128xf32>
    %5 = arith.addf %2, %4 : vector<64x128xf32>
    %cst_5 = arith.constant 0.000000e+00 : f32
    %6 = vector.broadcast %cst_5 : f32 to vector<64x128xf32>
    %7 = arith.maximumf %5, %6 : vector<64x128xf32>
    %8 = arith.truncf %7 : vector<64x128xf32> to vector<64x128xbf16>
    %c0_6 = arith.constant 0 : index
    %c0_7 = arith.constant 0 : index
    %9 = vector.load %arg4[%c0_6, %c0_7] : memref<64x64xbf16, #tpu.memory_space<vmem>>, vector<64x64xbf16>
    %cst_8 = arith.constant dense<0.000000e+00> : vector<64x128xf32>
    %10 = tpu.matmul %9, %8, %cst_8 {dimension_numbers = #tpu.dot_dimension_numbers<[1], [0], [0], [1], [0, 0, 1, 1], [], []>} : vector<64x64xbf16>, vector<64x128xbf16>, vector<64x128xf32> -> vector<64x128xf32>
    %c0_9 = arith.constant 0 : index
    %c0_10 = arith.constant 0 : index
    %11 = vector.load %arg5[%c0_9, %c0_10] : memref<64x1xf32, #tpu.memory_space<vmem>>, vector<64x1xf32>
    %12 = vector.broadcast %11 : vector<64x1xf32> to vector<64x128xf32>
    %13 = arith.addf %10, %12 : vector<64x128xf32>
    %cst_11 = arith.constant 0.000000e+00 : f32
    %14 = vector.broadcast %cst_11 : f32 to vector<64x128xf32>
    %15 = arith.maximumf %13, %14 : vector<64x128xf32>
    %16 = arith.truncf %15 : vector<64x128xf32> to vector<64x128xbf16>
    %c0_12 = arith.constant 0 : index
    %c0_13 = arith.constant 0 : index
    %17 = vector.load %arg6[%c0_12, %c0_13] : memref<4x64xbf16, #tpu.memory_space<vmem>>, vector<4x64xbf16>
    %cst_14 = arith.constant dense<0.000000e+00> : vector<4x128xf32>
    %18 = tpu.matmul %17, %16, %cst_14 {dimension_numbers = #tpu.dot_dimension_numbers<[1], [0], [0], [1], [0, 0, 1, 1], [], []>} : vector<4x64xbf16>, vector<64x128xbf16>, vector<4x128xf32> -> vector<4x128xf32>
    %c0_15 = arith.constant 0 : index
    %c0_16 = arith.constant 0 : index
    %19 = vector.load %arg7[%c0_15, %c0_16] : memref<4x1xf32, #tpu.memory_space<vmem>>, vector<4x1xf32>
    %20 = vector.broadcast %19 : vector<4x1xf32> to vector<4x128xf32>
    %21 = arith.addf %18, %20 : vector<4x128xf32>
    %22 = arith.truncf %21 : vector<4x128xf32> to vector<4x128xbf16>
    %c0_17 = arith.constant 0 : index
    %c0_18 = arith.constant 0 : index
    %23 = vector.load %arg8[%c0_17, %c0_18] : memref<4x128xbf16, #tpu.memory_space<vmem>>, vector<4x128xbf16>
    tpu.vector_store %arg8[%c0_17, %c0_18], %22 {strides = array<i32>} : memref<4x128xbf16, #tpu.memory_space<vmem>>, vector<4x128xbf16>,
    %cst_19 = arith.constant dense<0xFF800000> : vector<128xf32>
    %24 = vector.multi_reduction <maximumf>, %21, %cst_19 [0] : vector<4x128xf32> to vector<128xf32>
    %25 = vector.shape_cast %24 : vector<128xf32> to vector<1x128xf32>
    %26 = tpu.iota {dimensions = array<i32: 0>} : vector<4x128xi32>
    %27 = vector.broadcast %25 : vector<1x128xf32> to vector<4x128xf32>
    %28 = arith.cmpf oge, %21, %27 : vector<4x128xf32>
    %c4_i32 = arith.constant 4 : i32
    %29 = vector.broadcast %c4_i32 : i32 to vector<4x128xi32>
    %30 = arith.select %28, %26, %29 : vector<4x128xi1>, vector<4x128xi32>
    %cst_20 = arith.constant dense<2147483647> : vector<128xi32>
    %31 = vector.multi_reduction <minsi>, %30, %cst_20 [0] : vector<4x128xi32> to vector<128xi32>
    %32 = vector.shape_cast %31 : vector<128xi32> to vector<1x128xi32>
    %c0_21 = arith.constant 0 : index
    %c0_22 = arith.constant 0 : index
    %33 = vector.load %arg9[%c0_21, %c0_22] : memref<1x128xi32, #tpu.memory_space<vmem>>, vector<1x128xi32>
    tpu.vector_store %arg9[%c0_21, %c0_22], %32 {strides = array<i32>} : memref<1x128xi32, #tpu.memory_space<vmem>>, vector<1x128xi32>,
    return
  }
  func.func @transform_0(%arg0: i32) -> (i32, i32) {
    %c0_i32 = arith.constant 0 : i32
    %c0_i32_0 = arith.constant 0 : i32
    return %arg0, %c0_i32 : i32, i32
  }
  func.func @transform_1(%arg0: i32) -> (i32, i32) {
    %c0_i32 = arith.constant 0 : i32
    %c0_i32_0 = arith.constant 0 : i32
    %c0_i32_1 = arith.constant 0 : i32
    return %c0_i32, %c0_i32_0 : i32, i32
  }
  func.func @transform_2(%arg0: i32) -> (i32, i32) {
    %c0_i32 = arith.constant 0 : i32
    %c0_i32_0 = arith.constant 0 : i32
    %c0_i32_1 = arith.constant 0 : i32
    return %c0_i32, %c0_i32_0 : i32, i32
  }
  func.func @transform_3(%arg0: i32) -> (i32, i32) {
    %c0_i32 = arith.constant 0 : i32
    %c0_i32_0 = arith.constant 0 : i32
    %c0_i32_1 = arith.constant 0 : i32
    return %c0_i32, %c0_i32_0 : i32, i32
  }
  func.func @transform_4(%arg0: i32) -> (i32, i32) {
    %c0_i32 = arith.constant 0 : i32
    %c0_i32_0 = arith.constant 0 : i32
    %c0_i32_1 = arith.constant 0 : i32
    return %c0_i32, %c0_i32_0 : i32, i32
  }
  func.func @transform_5(%arg0: i32) -> (i32, i32) {
    %c0_i32 = arith.constant 0 : i32
    %c0_i32_0 = arith.constant 0 : i32
    %c0_i32_1 = arith.constant 0 : i32
    return %c0_i32, %c0_i32_0 : i32, i32
  }
  func.func @transform_6(%arg0: i32) -> (i32, i32) {
    %c0_i32 = arith.constant 0 : i32
    %c0_i32_0 = arith.constant 0 : i32
    %c0_i32_1 = arith.constant 0 : i32
    return %c0_i32, %c0_i32_0 : i32, i32
  }
  func.func @transform_7(%arg0: i32) -> (i32, i32) {
    %c0_i32 = arith.constant 0 : i32
    %c0_i32_0 = arith.constant 0 : i32
    return %c0_i32, %arg0 : i32, i32
  }
  func.func @transform_8(%arg0: i32) -> (i32, i32) {
    %c0_i32 = arith.constant 0 : i32
    %c0_i32_0 = arith.constant 0 : i32
    return %c0_i32, %arg0 : i32, i32
  }
}

</mosaic_0001>

<bundles_post_ra>
// kernel: dqn_forward.1
= control target key start
LH: loop header
LB: loop body
LE: loop exit
PB: predicated region body
PF: predicated region fallthrough
CT: control target
= control target key end

     0   :  { %vm161_vm0 = vcmask 64512   ;;  %v655_v1 = vmov 0   ;;  %vm351_vm1 = vcmask 523264   ;;  %vm657_vm2 = vmmov 0   ;;  %s838_s0 = inlined_call_operand.vmem [shape: bf16[128,8], index: 0, kind: input, shape index: {}]   ;;  %s839_s1 = inlined_call_operand.vmem [shape: bf16[64,8], index: 1, kind: input, shape index: {}]   ;;  %s840_s2 = inlined_call_operand.vmem [shape: f32[64,1], index: 2, kind: input, shape index: {}]   ;;  %s841_s4 = inlined_call_operand.vmem [shape: f32[64,1], index: 4, kind: input, shape index: {}]   ;;  %s842_s6 = inlined_call_operand.vmem [shape: f32[4,1], index: 6, kind: input, shape index: {}]   ;;  %s843_s3 = inlined_call_operand.vmem [shape: bf16[64,64], index: 3, kind: input, shape index: {}]   ;;  %s844_s5 = inlined_call_operand.vmem [shape: bf16[4,64], index: 5, kind: input, shape index: {}]   ;;  %s845_s7 = inlined_call_operand.vmem [shape: bf16[4,128], index: 7, kind: output, shape index: {0}]   ;;  %s846_s8 = inlined_call_operand.vmem [shape: s32[1,128], index: 8, kind: output, shape index: {1}]  }
   0x1   :  { %v639_v0 = vld [vmem:[%s838_s0] sm:$0xff]   ;;  %637 = vset.pattern.permute.xlu0 %v655_v1  ;;  %638 = vset.pattern.permute.xlu1 %v655_v1  ;;  %v640_v2 = vld [vmem:[%s838_s0 + $0x8] sm:$0xff]   ;;  %v641_v4 = vld [vmem:[%s838_s0 + $0x10] sm:$0xff]   ;;  %vm493_vm3 = vcmask 1043456  }
   0x2   :  { %626 = vmatprep.subr.msk.bf16.mxu0 %vm161_vm0, %v639_v0  ;;  %v175_v3 = vsel %vm161_vm0, %v639_v0, 0  ;;  %v178_v5 = vsel %vm161_vm0, %v640_v2, 0  ;;  %v647_v6 = vld [vmem:[%s839_s1] sm:$0xff]   ;;  %v55_v8 = vld [vmem:[%s840_s2 + $0x10] sm:$0xff]  ;;  %v54_v9 = vld [vmem:[%s840_s2 + $0x8] sm:$0xff]  ;;  %v181_v11 = vsel %vm161_vm0, %v641_v4, 0 }
   0x3   :  { %575 = vmatpush3.bf16.xpose.msra.mxu0 %v175_v3  ;;  %590 = vmatprep.mubr.msk.bf16.mxu0 %vm161_vm0, %v647_v6  ;;  %v53_v7 = vld [vmem:[%s840_s2] sm:$0xff]  ;;  %v56_v10 = vld [vmem:[%s840_s2 + $0x18] sm:$0xff]  ;;  %v58_v14 = vld [vmem:[%s840_s2 + $0x28] sm:$0xff] }
   0x4   :  { %627 = vmatprep.subr.msk.bf16.mxu0 %vm161_vm0, %v640_v2  ;;  %63 = vperm.xlu0 %637, %v53_v7   ;;  %v642_v12 = vld [vmem:[%s838_s0 + $0x18] sm:$0xff]   ;;  %v57_v13 = vld [vmem:[%s840_s2 + $0x20] sm:$0xff]  ;;  %v59_v15 = vld [vmem:[%s840_s2 + $0x30] sm:$0xff] }
   0x5   :  { %73 = vperm.xlu1 %638, %v55_v8   ;;  %v60_v16 = vld [vmem:[%s840_s2 + $0x38] sm:$0xff]  ;;  %v184_v17 = vsel %vm161_vm0, %v642_v12, 0  ;;  %v643_v18 = vld [vmem:[%s838_s0 + $0x20] sm:$0xff]   ;;  %v284_v20 = vld [vmem:[%s841_s4 + $0x8] sm:$0xff] }
   0x6   :  { %v283_v19 = vld [vmem:[%s841_s4] sm:$0xff]  ;;  %v285_v21 = vld [vmem:[%s841_s4 + $0x10] sm:$0xff]  ;;  %v286_v22 = vld [vmem:[%s841_s4 + $0x18] sm:$0xff]  ;;  %v187_v23 = vsel %vm161_vm0, %v643_v18, 0 }
   0x7   :  { %v644_v24 = vld [vmem:[%s838_s0 + $0x28] sm:$0xff]   ;;  %v287_v25 = vld [vmem:[%s841_s4 + $0x20] sm:$0xff]  ;;  %v289_v27 = vld [vmem:[%s841_s4 + $0x30] sm:$0xff] }
   0x8   :  { %68 = vperm.xlu0 %637, %v54_v9   ;;  %v288_v26 = vld [vmem:[%s841_s4 + $0x28] sm:$0xff]  ;;  %v290_v28 = vld [vmem:[%s841_s4 + $0x38] sm:$0xff]  ;;  %v190_v29 = vsel %vm161_vm0, %v644_v24, 0  ;;  %v645_v30 = vld [vmem:[%s838_s0 + $0x30] sm:$0xff]  }
   0x9   :  { %78 = vperm.xlu1 %638, %v56_v10   ;;  %v442_v31 = vld [vmem:[%s842_s6] sm:$0xf]  ;;  %v193_v32 = vsel %vm161_vm0, %v645_v30, 0  ;;  %v646_v33 = vld [vmem:[%s838_s0 + $0x38] sm:$0xff]   ;;  %v648_v35 = vld [vmem:[%s839_s1 + $0x8] sm:$0xff]  }
   0xa   :  { %v196_v34 = vsel %vm161_vm0, %v646_v33, 0  ;;  %v649_v36 = vld [vmem:[%s839_s1 + $0x10] sm:$0xff]   ;;  %v650_v37 = vld [vmem:[%s839_s1 + $0x18] sm:$0xff]   ;;  %v651_v38 = vld [vmem:[%s843_s3] sm:$0xff]  }
   0xb   :  { %577 = vmatpush3.bf16.xpose.msra.mxu0 %v178_v5  ;;  %606 = vmatprep.mubr.msk.bf16.mxu1 %vm351_vm1, %v651_v38 }
   0xc   :  { %628 = vmatprep.subr.msk.bf16.mxu0 %vm161_vm0, %v641_v4  ;;  %83 = vperm.xlu0 %637, %v57_v13   ;;  %v654_v13 = vld [vmem:[%s843_s3 + $0x18] sm:$0xff]  }
   0xd   :  { %88 = vperm.xlu1 %638, %v58_v14   ;;  %v656_v14 = vmov 0.0  }
  0x10   :  { %93 = vperm.xlu0 %637, %v59_v15  }
  0x11   :  { %98 = vperm.xlu1 %638, %v60_v16  }
  0x13   :  { %579 = vmatpush3.bf16.xpose.msra.mxu0 %v181_v11  ;;  %v652_v11 = vld [vmem:[%s843_s3 + $0x8] sm:$0xff]  }
  0x14   :  { %629 = vmatprep.subr.msk.bf16.mxu0 %vm161_vm0, %v642_v12  ;;  %293 = vperm.xlu0 %637, %v283_v19   ;;  %v653_v12 = vld [vmem:[%s843_s3 + $0x10] sm:$0xff]  }
  0x15   :  { %298 = vperm.xlu1 %638, %v284_v20  }
  0x18   :  { %303 = vperm.xlu0 %637, %v285_v21  }
  0x19   :  { %308 = vperm.xlu1 %638, %v286_v22  }
  0x1b   :  { %581 = vmatpush3.bf16.xpose.msra.mxu0 %v184_v17 }
  0x1c   :  { %630 = vmatprep.subr.msk.bf16.mxu0 %vm161_vm0, %v643_v18  ;;  %313 = vperm.xlu0 %637, %v287_v25  }
  0x1d   :  { %318 = vperm.xlu1 %638, %v288_v26  }
  0x20   :  { %323 = vperm.xlu0 %637, %v289_v27  }
  0x21   :  { %328 = vperm.xlu1 %638, %v290_v28  }
  0x23   :  { %583 = vmatpush3.bf16.xpose.msra.mxu0 %v187_v23 }
  0x24   :  { %631 = vmatprep.subr.msk.bf16.mxu0 %vm161_vm0, %v644_v24  ;;  %445 = vperm.xlu0 %637, %v442_v31  }
  0x2b   :  { %585 = vmatpush3.bf16.xpose.msra.mxu0 %v190_v29 }
  0x2c   :  { %632 = vmatprep.subr.msk.bf16.mxu0 %vm161_vm0, %v645_v30 }
  0x33   :  { %587 = vmatpush3.bf16.xpose.msra.mxu0 %v193_v32 }
  0x34   :  { %633 = vmatprep.subr.msk.bf16.mxu0 %vm161_vm0, %v646_v33 }
  0x3b   :  { %589 = vmatpush3.bf16.xpose.msra.mxu0 %v196_v34 }
  0x42   :  { %591 = vmatmul.mubr.msk.bf16.vlgmr.msra.gmra.mrb[0].mxu0 %vm161_vm0, %v648_v35 }
  0x43   :  { %594 = vmatprep.mubr.msk.bf16.mxu0 %vm161_vm0, %v649_v36 }
  0x4a   :  { %595 = vmatmul.mubr.msk.bf16.gmra.mrb[4].mxu0 %vm161_vm0, %v650_v37 }
  0x83   :  { %v64_v39 = vpop.permute.xlu0 %63 }
  0x84   :  { %v74_v40 = vpop.permute.xlu1 %73 }
  0x87   :  { %v69_v41 = vpop.permute.xlu0 %68 }
  0x88   :  { %v79_v42 = vpop.permute.xlu1 %78 }
  0x8b   :  { %v84_v46 = vpop.permute.xlu0 %83 }
  0x8c   :  { %v89_v51 = vpop.permute.xlu1 %88 }
  0x8f   :  { %v94_v58 = vpop.permute.xlu0 %93 }
  0x90   :  { %v99_v63 = vpop.permute.xlu1 %98 }
  0x93   :  { %v294_v15 = vpop.permute.xlu0 %293 }
  0x94   :  { %v299_v16 = vpop.permute.xlu1 %298 }
  0x97   :  { %v304_v17 = vpop.permute.xlu0 %303 }
  0x98   :  { %v309_v18 = vpop.permute.xlu1 %308 }
  0x9b   :  { %v314_v22 = vpop.permute.xlu0 %313 }
  0x9c   :  { %v319_v27 = vpop.permute.xlu1 %318 }
  0x9f   :  { %v324_v34 = vpop.permute.xlu0 %323 }
 0x115   :  { %v592_v43 = vpop.f32.mrb[0].mxu0 }
 0x116   :  { %v241_v44 = vadd.f32 %v592_v43, %v74_v40  ;;  %v232_v45 = vpop.f32.mrb[1].mxu0 }
 0x117   :  { %v233_v47 = vadd.f32 %v232_v45, %v64_v39  ;;  %v593_v48 = vpop.f32.mrb[2].mxu0  ;;  %v329_v39 = vpop.permute.xlu1 %328 }
 0x118   :  { %v244_v49 = vadd.f32 %v593_v48, %v79_v42  ;;  %v235_v50 = vpop.f32.mrb[3].mxu0  ;;  %v265_v53 = vmax.f32 %v241_v44, 0.0 }
 0x119   :  { %v236_v52 = vadd.f32 %v235_v50, %v69_v41  ;;  %v263_v55 = vmax.f32 %v233_v47, 0.0 }
 0x11a   :  { %v266_v54 = vmax.f32 %v244_v49, 0.0 }
 0x11b   :  { %v264_v56 = vmax.f32 %v236_v52, 0.0  ;;  %v446_v52 = vpop.permute.xlu0 %445 }
 0x11c   :  { %v272_v57 = vpack.c.bf16 %v266_v54, %v265_v53 }
 0x11d   :  { %v596_v59 = vpop.f32.mrb[4].mxu0  ;;  %v271_v60 = vpack.c.bf16 %v264_v56, %v263_v55 }
 0x11e   :  { %v257_v61 = vadd.f32 %v596_v59, %v94_v58  ;;  %v248_v62 = vpop.f32.mrb[5].mxu0 }
 0x11f   :  { %v249_v0 = vadd.f32 %v248_v62, %v84_v46  ;;  %v597_v1 = vpop.f32.mrb[6].mxu0  ;;  %598 = vmatprep.subr.bf16.mxu1 %v271_v60 }
 0x120   :  { %v260_v2 = vadd.f32 %v597_v1, %v99_v63  ;;  %v251_v3 = vpop.f32.mrb[7].mxu0  ;;  %599 = vmatpush3.bf16.msra.mxu1 %v271_v60  ;;  %v269_v5 = vmax.f32 %v257_v61, 0.0  ;;  %v501_v63 = vlaneseq }
 0x121   :  { %v252_v4 = vadd.f32 %v251_v3, %v89_v51  ;;  %600 = vmatprep.subr.bf16.mxu1 %v272_v57  ;;  %v267_v7 = vmax.f32 %v249_v0, 0.0  ;;  %v441_v51 = vld [vmem:[%s844_s5] sm:$0x3] }
 0x122   :  { %v270_v6 = vmax.f32 %v260_v2, 0.0  ;;  %v502_v2 = vshrl.u32 %v501_v63, 7 }
 0x123   :  { %v268_v8 = vmax.f32 %v252_v4, 0.0 }
 0x124   :  { %v274_v9 = vpack.c.bf16 %v270_v6, %v269_v5  ;;  %601 = vmatpush3.bf16.msra.mxu1 %v272_v57 }
 0x125   :  { %v273_v10 = vpack.c.bf16 %v268_v8, %v267_v7 }
 0x127   :  { %602 = vmatprep.subr.bf16.mxu1 %v273_v10 }
 0x128   :  { %603 = vmatpush3.bf16.msra.mxu1 %v273_v10 }
 0x129   :  { %604 = vmatprep.subr.bf16.mxu1 %v274_v9 }
 0x12c   :  { %605 = vmatpush3.bf16.msra.mxu1 %v274_v9 }
 0x12d   :  { %614 = vmatprep.subr.bf16.mxu1 %v656_v14 }
 0x12f   :  { %607 = vmatmul.mubr.msk.bf16.vlgmr.msra.gmra.mrb[0].mxu1 %vm351_vm1, %v652_v11 }
 0x130   :  { %610 = vmatprep.mubr.msk.bf16.mxu1 %vm351_vm1, %v653_v12 }
 0x137   :  { %611 = vmatmul.mubr.msk.bf16.gmra.mrb[4].mxu1 %vm351_vm1, %v654_v13 }
 0x138   :  { %622 = vmatprep.mubr.msk.bf16.mxu1 %vm657_vm2, %v656_v14 }
 0x202   :  { %v608_v19 = vpop.f32.mrb[0].mxu1 }
 0x203   :  { %v407_v20 = vadd.f32 %v608_v19, %v304_v17  ;;  %v398_v21 = vpop.f32.mrb[1].mxu1 }
 0x204   :  { %v399_v23 = vadd.f32 %v398_v21, %v294_v15  ;;  %v609_v24 = vpop.f32.mrb[2].mxu1 }
 0x205   :  { %v410_v25 = vadd.f32 %v609_v24, %v309_v18  ;;  %v401_v26 = vpop.f32.mrb[3].mxu1  ;;  %v431_v29 = vmax.f32 %v407_v20, 0.0 }
 0x206   :  { %v402_v28 = vadd.f32 %v401_v26, %v299_v16  ;;  %v429_v31 = vmax.f32 %v399_v23, 0.0 }
 0x207   :  { %v432_v30 = vmax.f32 %v410_v25, 0.0 }
 0x208   :  { %v430_v32 = vmax.f32 %v402_v28, 0.0 }
 0x209   :  { %v438_v33 = vpack.c.bf16 %v432_v30, %v431_v29 }
 0x20a   :  { %v437_v35 = vpack.c.bf16 %v430_v32, %v429_v31  ;;  %v612_v36 = vpop.f32.mrb[4].mxu1 }
 0x20b   :  { %v423_v37 = vadd.f32 %v612_v36, %v324_v34  ;;  %v414_v38 = vpop.f32.mrb[5].mxu1 }
 0x20c   :  { %v415_v40 = vadd.f32 %v414_v38, %v314_v22  ;;  %v613_v41 = vpop.f32.mrb[6].mxu1  ;;  %615 = vmatpush3.bf16.msra.mxu1 %v437_v35 }
 0x20d   :  { %v426_v42 = vadd.f32 %v613_v41, %v329_v39  ;;  %v417_v43 = vpop.f32.mrb[7].mxu1  ;;  %616 = vmatprep.subr.bf16.mxu1 %v656_v14  ;;  %v435_v45 = vmax.f32 %v423_v37, 0.0 }
 0x20e   :  { %v418_v44 = vadd.f32 %v417_v43, %v319_v27  ;;  %v433_v47 = vmax.f32 %v415_v40, 0.0 }
 0x20f   :  { %v436_v46 = vmax.f32 %v426_v42, 0.0 }
 0x210   :  { %v434_v48 = vmax.f32 %v418_v44, 0.0  ;;  %617 = vmatpush3.bf16.msra.mxu1 %v438_v33 }
 0x211   :  { %v440_v49 = vpack.c.bf16 %v436_v46, %v435_v45  ;;  %618 = vmatprep.subr.bf16.mxu1 %v656_v14 }
 0x212   :  { %v439_v50 = vpack.c.bf16 %v434_v48, %v433_v47 }
 0x214   :  { %619 = vmatpush3.bf16.msra.mxu1 %v439_v50 }
 0x215   :  { %620 = vmatprep.subr.bf16.mxu1 %v656_v14 }
 0x218   :  { %621 = vmatpush3.bf16.msra.mxu1 %v440_v49 }
 0x21b   :  { %623 = vmatmul.mubr.msk.bf16.vlgmr.msra.gmra.mrb[8].mxu1 %vm351_vm1, %v441_v51 }
 0x2ee   :  { %v485_v53 = vpop.f32.mrb[8].mxu1 }
 0x2ef   :  { %v486_v54 = vadd.f32 %v485_v53, %v446_v52  ;;  %v624_v55 = vpop.f32.mrb[9].mxu1 }
 0x2f0   :  { %v488_v56 = vpop.f32.mrb[10].mxu1 }
 0x2f1   :  { %v491_v57 = vpack.c.bf16 %v486_v54, %v486_v54  ;;  %v494_v58 = vsel %vm493_vm3, %v486_v54, -inf  ;;  %v625_v59 = vpop.f32.mrb[11].mxu1 }
 0x2f2   :  { %v495_v60 = vrot.slane %v494_v58, 4 }
 0x2f3   :  { %492 = vst [vmem:[%s845_s7] sm:$0x3] %v491_v57 }
 0x2f4   :  { %v496_v61 = vmax.f32 %v494_v58, %v495_v60 }
 0x2f6   :  { %v497_v62 = vrot.slane %v496_v61, 2 }
 0x2f8   :  { %v498_v0 = vmax.f32 %v496_v61, %v497_v62 }
 0x2fa   :  { %v499_v1 = vrot.slane %v498_v0, 1 }
 0x2fc   :  { %v500_v3 = vmax.f32 %v498_v0, %v499_v1 }
 0x2fe   :  { %vm503_vm4 = vcmp.ge.f32.partialorder %v486_v54, %v500_v3 }
 0x2ff   :  { %v504_v4 = vsel %vm503_vm4, %v502_v2, 4 }
 0x300   :  { %v505_v5 = vsel %vm493_vm3, %v504_v4, 2147483647 }
 0x301   :  { %v506_v6 = vrot.slane %v505_v5, 4 }
 0x303   :  { %vm507_vm5 = vcmp.lt.s32.totalorder %v505_v5, %v506_v6 }
 0x304   :  { %v508_v7 = vsel %vm507_vm5, %v505_v5, %v506_v6 }
 0x305   :  { %v509_v8 = vrot.slane %v508_v7, 2 }
 0x307   :  { %vm510_vm6 = vcmp.lt.s32.totalorder %v508_v7, %v509_v8 }
 0x308   :  { %v511_v9 = vsel %vm510_vm6, %v508_v7, %v509_v8 }
 0x309   :  { %v512_v10 = vrot.slane %v511_v9, 1 }
 0x30b   :  { %vm513_vm7 = vcmp.lt.s32.totalorder %v511_v9, %v512_v10 }
 0x30c   :  { %v514_v11 = vsel %vm513_vm7, %v511_v9, %v512_v10 }
 0x30d   :  { %515 = vst [vmem:[%s846_s8] sm:$0x1] %v514_v11 }

</bundles_post_ra>
